<compile_context>
chip_gen: v7x
topology: tpu7x:2x2x1
jax: 0.10.0
libtpu: 0.0.40
codegen_flags: <defaults>
</compile_context>

<pallas_src>
import jax
import jax.numpy as jnp
from jax.experimental import pallas as pl
from jax.experimental.pallas import tpu as pltpu

_LANE = 128
_SUBLANE = 8


def _round_up(v, m):
    return ((v + m - 1) // m) * m


def encoder_kernel(x_ref, y_ref, w1x_ref, w1y_ref, b1_ref,
                   w2_ref, b2_ref, w3_ref, b3_ref, out_ref):
    """One batch tile per grid step; weights stay VMEM-resident."""
    # Layer 1: fused concat -> h = x@W1x + y@W1y + b1, ReLU.
    # W1x/W1y are tiny (K = x_dim/y_dim); kept f32 in HBM, cast here.
    h = jnp.dot(x_ref[...].astype(jnp.bfloat16),
                w1x_ref[...].astype(jnp.bfloat16),
                preferred_element_type=jnp.float32)
    h = h + jnp.dot(y_ref[...].astype(jnp.bfloat16),
                    w1y_ref[...].astype(jnp.bfloat16),
                    preferred_element_type=jnp.float32)
    h = jnp.maximum(h + b1_ref[...], 0.0)

    # Layer 2: Linear (bf16 operands, f32 accumulation) + ReLU.
    h = jnp.dot(h.astype(jnp.bfloat16), w2_ref[...],
                preferred_element_type=jnp.float32)
    h = jnp.maximum(h + b2_ref[...], 0.0)

    # Layer 3: Linear, lane-dense (r_dim padded to 128) output.
    r = jnp.dot(h.astype(jnp.bfloat16), w3_ref[...],
                preferred_element_type=jnp.float32)
    out_ref[...] = (r + b3_ref[...]).astype(out_ref.dtype)


def encoder_forward(x, y, params, *, batch_tile=128):
    """x: (B, x_dim), y: (B, y_dim) -> (B, r_dim)."""
    w1, b1, w2, b2, w3, b3 = params
    B, x_dim = x.shape
    y_dim = y.shape[1]
    h_dim = w1.shape[1]
    r_dim = w3.shape[1]

    # Fuse the concat: split W1 into its x- and y- row blocks.
    w1x = w1[:x_dim].astype(jnp.float32)
    w1y = w1[x_dim:].astype(jnp.float32)

    # Lane-dense output: pad r_dim up to a multiple of 128 (sliced below).
    r_pad = _round_up(r_dim, _LANE)
    w3p = jnp.zeros((h_dim, r_pad), jnp.float32).at[:, :r_dim].set(w3)
    b3p = jnp.zeros((r_pad,), jnp.float32).at[:r_dim].set(b3)

    # Batch tile: multiple of 8 sublanes, capped so VMEM stays bounded.
    TB = min(_round_up(B, _SUBLANE), batch_tile)
    B_pad = _round_up(B, TB)
    if B_pad != B:
        x = jnp.pad(x, ((0, B_pad - B), (0, 0)))
        y = jnp.pad(y, ((0, B_pad - B), (0, 0)))

    # bf16 storage for the larger weights (halves weight DMA, MXU-native).
    w2_b = w2.astype(jnp.bfloat16)
    w3_b = w3p.astype(jnp.bfloat16)
    b1r = b1.reshape(1, h_dim).astype(jnp.float32)
    b2r = b2.reshape(1, h_dim).astype(jnp.float32)
    b3r = b3p.reshape(1, r_pad).astype(jnp.float32)

    grid = (B_pad // TB,)
    batched = lambda shape: pl.BlockSpec(shape, lambda i: (i, 0))
    resident = lambda shape: pl.BlockSpec(shape, lambda i: (0, 0))

    # Explicit VMEM budget (sized against v7x's 64 MiB physical / 32 MiB
    # default scoped VMEM): double-buffered activations + resident weights
    # + intermediates, with 2x slack.
    f32, bf16 = 4, 2
    vmem_bytes = (
        2 * TB * (x_dim + y_dim) * f32                      # x, y buffers
        + 2 * TB * r_pad * f32                              # output buffers
        + 2 * ((x_dim + y_dim) * h_dim * f32                # W1x, W1y
               + (h_dim * h_dim + h_dim * r_pad) * bf16     # W2, W3
               + (2 * h_dim + r_pad) * f32)                 # biases
        + 4 * TB * max(h_dim, r_pad) * f32                  # live intermediates
    )
    vmem_limit = int(min(max(2 * vmem_bytes, 4 << 20), 48 << 20))

    out = pl.pallas_call(
        encoder_kernel,
        out_shape=jax.ShapeDtypeStruct((B_pad, r_pad), jnp.float32),
        grid_spec=pltpu.PrefetchScalarGridSpec(
            num_scalar_prefetch=0,
            grid=grid,
            in_specs=[
                batched((TB, x_dim)), batched((TB, y_dim)),
                resident((x_dim, h_dim)), resident((y_dim, h_dim)),
                resident((1, h_dim)),
                resident((h_dim, h_dim)), resident((1, h_dim)),
                resident((h_dim, r_pad)), resident((1, r_pad)),
            ],
            out_specs=batched((TB, r_pad)),
        ),
        compiler_params=pltpu.CompilerParams(
            dimension_semantics=("parallel",),   # shards across v7x's 2 TCs
            vmem_limit_bytes=vmem_limit,
        ),
    )(x, y, w1x, w1y, b1r, w2_b, b2r, w3_b, b3r)

    return out[:B, :r_dim]


def init_encoder_params(key, x_dim, y_dim, h_dim, r_dim):
    """Deterministic init mimicking nn.Linear's U(-1/sqrt(fan_in), 1/sqrt(fan_in)).

    Weights returned pre-transposed as (in, out)."""
    dims = [(x_dim + y_dim, h_dim), (h_dim, h_dim), (h_dim, r_dim)]
    params = []
    keys = jax.random.split(key, 2 * len(dims))
    for i, (fan_in, fan_out) in enumerate(dims):
        bound = 1.0 / jnp.sqrt(fan_in)
        w = jax.random.uniform(keys[2 * i], (fan_in, fan_out),
                               minval=-bound, maxval=bound, dtype=jnp.float32)
        b = jax.random.uniform(keys[2 * i + 1], (fan_out,),
                               minval=-bound, maxval=bound, dtype=jnp.float32)
        params += [w, b]
    return tuple(params)


if __name__ == "__main__":
    # Small shapes consistent with Encoder.forward: x (B, x_dim), y (B, y_dim)
    batch, x_dim, y_dim, h_dim, r_dim = 8, 2, 2, 32, 16

    key = jax.random.PRNGKey(0)
    kx, ky, kp = jax.random.split(key, 3)
    x = jax.random.normal(kx, (batch, x_dim), dtype=jnp.float32)
    y = jax.random.normal(ky, (batch, y_dim), dtype=jnp.float32)
    params = init_encoder_params(kp, x_dim, y_dim, h_dim, r_dim)

    r = encoder_forward(x, y, params)
    jax.block_until_ready(r)

    # Pure-JAX f32 reference for sanity check (kernel uses bf16 matmul
    # operands with f32 accumulation, so tolerance is relaxed accordingly).
    w1, b1, w2, b2, w3, b3 = params
    inp = jnp.concatenate([x, y], axis=1)
    ref = jnp.maximum(inp @ w1 + b1, 0.0)
    ref = jnp.maximum(ref @ w2 + b2, 0.0)
    ref = ref @ w3 + b3
    assert r.shape == (batch, r_dim)
    assert jnp.allclose(r, ref, atol=5e-2, rtol=5e-2)

    print("KERNEL_OK")
</pallas_src>

<mosaic_0001>
module attributes {stable_mosaic.version = 11 : i64} {
  func.func @encoder_kernel(%arg0: i32, %arg1: memref<8x2xf32, #tpu.memory_space<vmem>>, %arg2: memref<8x2xf32, #tpu.memory_space<vmem>>, %arg3: memref<2x32xf32, #tpu.memory_space<vmem>>, %arg4: memref<2x32xf32, #tpu.memory_space<vmem>>, %arg5: memref<1x32xf32, #tpu.memory_space<vmem>>, %arg6: memref<32x32xbf16, #tpu.memory_space<vmem>>, %arg7: memref<1x32xf32, #tpu.memory_space<vmem>>, %arg8: memref<32x128xbf16, #tpu.memory_space<vmem>>, %arg9: memref<1x128xf32, #tpu.memory_space<vmem>>, %arg10: memref<8x128xf32, #tpu.memory_space<vmem>>) attributes {dimension_semantics = [#tpu.dimension_semantics<parallel>], iteration_bounds = array<i64: 1>, scalar_prefetch = 0 : i64, scratch_operands = 0 : i64, tpu.core_type = #tpu.core_type<tc>, window_params = [{transform_indices = @transform_0, window_bounds = array<i64: 8, 2>}, {transform_indices = @transform_1, window_bounds = array<i64: 8, 2>}, {pipeline_mode = #tpu.pipeline_mode<synchronous>, transform_indices = @transform_2, window_bounds = array<i64: 2, 32>}, {pipeline_mode = #tpu.pipeline_mode<synchronous>, transform_indices = @transform_3, window_bounds = array<i64: 2, 32>}, {pipeline_mode = #tpu.pipeline_mode<synchronous>, transform_indices = @transform_4, window_bounds = array<i64: 1, 32>}, {pipeline_mode = #tpu.pipeline_mode<synchronous>, transform_indices = @transform_5, window_bounds = array<i64: 32, 32>}, {pipeline_mode = #tpu.pipeline_mode<synchronous>, transform_indices = @transform_6, window_bounds = array<i64: 1, 32>}, {pipeline_mode = #tpu.pipeline_mode<synchronous>, transform_indices = @transform_7, window_bounds = array<i64: 32, 128>}, {pipeline_mode = #tpu.pipeline_mode<synchronous>, transform_indices = @transform_8, window_bounds = array<i64: 1, 128>}, {transform_indices = @transform_9, window_bounds = array<i64: 8, 128>}]} {
    %c0 = arith.constant 0 : index
    %c0_0 = arith.constant 0 : index
    %0 = vector.load %arg1[%c0, %c0_0] : memref<8x2xf32, #tpu.memory_space<vmem>>, vector<8x2xf32>
    %1 = arith.truncf %0 : vector<8x2xf32> to vector<8x2xbf16>
    %c0_1 = arith.constant 0 : index
    %c0_2 = arith.constant 0 : index
    %2 = vector.load %arg3[%c0_1, %c0_2] : memref<2x32xf32, #tpu.memory_space<vmem>>, vector<2x32xf32>
    %3 = arith.truncf %2 : vector<2x32xf32> to vector<2x32xbf16>
    %cst = arith.constant dense<0.000000e+00> : vector<8x32xf32>
    %4 = tpu.matmul %1, %3, %cst {dimension_numbers = #tpu.dot_dimension_numbers<[1], [0], [0], [1], [0, 0, 1, 1], [], []>} : vector<8x2xbf16>, vector<2x32xbf16>, vector<8x32xf32> -> vector<8x32xf32>
    %c0_3 = arith.constant 0 : index
    %c0_4 = arith.constant 0 : index
    %5 = vector.load %arg2[%c0_3, %c0_4] : memref<8x2xf32, #tpu.memory_space<vmem>>, vector<8x2xf32>
    %6 = arith.truncf %5 : vector<8x2xf32> to vector<8x2xbf16>
    %c0_5 = arith.constant 0 : index
    %c0_6 = arith.constant 0 : index
    %7 = vector.load %arg4[%c0_5, %c0_6] : memref<2x32xf32, #tpu.memory_space<vmem>>, vector<2x32xf32>
    %8 = arith.truncf %7 : vector<2x32xf32> to vector<2x32xbf16>
    %cst_7 = arith.constant dense<0.000000e+00> : vector<8x32xf32>
    %9 = tpu.matmul %6, %8, %cst_7 {dimension_numbers = #tpu.dot_dimension_numbers<[1], [0], [0], [1], [0, 0, 1, 1], [], []>} : vector<8x2xbf16>, vector<2x32xbf16>, vector<8x32xf32> -> vector<8x32xf32>
    %10 = arith.addf %4, %9 : vector<8x32xf32>
    %c0_8 = arith.constant 0 : index
    %c0_9 = arith.constant 0 : index
    %11 = vector.load %arg5[%c0_8, %c0_9] : memref<1x32xf32, #tpu.memory_space<vmem>>, vector<1x32xf32>
    %12 = vector.broadcast %11 : vector<1x32xf32> to vector<8x32xf32>
    %13 = arith.addf %10, %12 : vector<8x32xf32>
    %cst_10 = arith.constant 0.000000e+00 : f32
    %14 = vector.broadcast %cst_10 : f32 to vector<8x32xf32>
    %15 = arith.maximumf %13, %14 : vector<8x32xf32>
    %16 = arith.truncf %15 : vector<8x32xf32> to vector<8x32xbf16>
    %c0_11 = arith.constant 0 : index
    %c0_12 = arith.constant 0 : index
    %17 = vector.load %arg6[%c0_11, %c0_12] : memref<32x32xbf16, #tpu.memory_space<vmem>>, vector<32x32xbf16>
    %cst_13 = arith.constant dense<0.000000e+00> : vector<8x32xf32>
    %18 = tpu.matmul %16, %17, %cst_13 {dimension_numbers = #tpu.dot_dimension_numbers<[1], [0], [0], [1], [0, 0, 1, 1], [], []>} : vector<8x32xbf16>, vector<32x32xbf16>, vector<8x32xf32> -> vector<8x32xf32>
    %c0_14 = arith.constant 0 : index
    %c0_15 = arith.constant 0 : index
    %19 = vector.load %arg7[%c0_14, %c0_15] : memref<1x32xf32, #tpu.memory_space<vmem>>, vector<1x32xf32>
    %20 = vector.broadcast %19 : vector<1x32xf32> to vector<8x32xf32>
    %21 = arith.addf %18, %20 : vector<8x32xf32>
    %cst_16 = arith.constant 0.000000e+00 : f32
    %22 = vector.broadcast %cst_16 : f32 to vector<8x32xf32>
    %23 = arith.maximumf %21, %22 : vector<8x32xf32>
    %24 = arith.truncf %23 : vector<8x32xf32> to vector<8x32xbf16>
    %c0_17 = arith.constant 0 : index
    %c0_18 = arith.constant 0 : index
    %25 = vector.load %arg8[%c0_17, %c0_18] : memref<32x128xbf16, #tpu.memory_space<vmem>>, vector<32x128xbf16>
    %cst_19 = arith.constant dense<0.000000e+00> : vector<8x128xf32>
    %26 = tpu.matmul %24, %25, %cst_19 {dimension_numbers = #tpu.dot_dimension_numbers<[1], [0], [0], [1], [0, 0, 1, 1], [], []>} : vector<8x32xbf16>, vector<32x128xbf16>, vector<8x128xf32> -> vector<8x128xf32>
    %c0_20 = arith.constant 0 : index
    %c0_21 = arith.constant 0 : index
    %27 = vector.load %arg9[%c0_20, %c0_21] : memref<1x128xf32, #tpu.memory_space<vmem>>, vector<1x128xf32>
    %28 = vector.broadcast %27 : vector<1x128xf32> to vector<8x128xf32>
    %29 = arith.addf %26, %28 : vector<8x128xf32>
    %c0_22 = arith.constant 0 : index
    %c0_23 = arith.constant 0 : index
    %30 = vector.load %arg10[%c0_22, %c0_23] : memref<8x128xf32, #tpu.memory_space<vmem>>, vector<8x128xf32>
    tpu.vector_store %arg10[%c0_22, %c0_23], %29 {strides = array<i32>} : memref<8x128xf32, #tpu.memory_space<vmem>>, vector<8x128xf32>,
    return
  }
  func.func @transform_0(%arg0: i32) -> (i32, i32) {
    %c0_i32 = arith.constant 0 : i32
    %c0_i32_0 = arith.constant 0 : i32
    return %arg0, %c0_i32 : i32, i32
  }
  func.func @transform_1(%arg0: i32) -> (i32, i32) {
    %c0_i32 = arith.constant 0 : i32
    %c0_i32_0 = arith.constant 0 : i32
    return %arg0, %c0_i32 : i32, i32
  }
  func.func @transform_2(%arg0: i32) -> (i32, i32) {
    %c0_i32 = arith.constant 0 : i32
    %c0_i32_0 = arith.constant 0 : i32
    %c0_i32_1 = arith.constant 0 : i32
    return %c0_i32, %c0_i32_0 : i32, i32
  }
  func.func @transform_3(%arg0: i32) -> (i32, i32) {
    %c0_i32 = arith.constant 0 : i32
    %c0_i32_0 = arith.constant 0 : i32
    %c0_i32_1 = arith.constant 0 : i32
    return %c0_i32, %c0_i32_0 : i32, i32
  }
  func.func @transform_4(%arg0: i32) -> (i32, i32) {
    %c0_i32 = arith.constant 0 : i32
    %c0_i32_0 = arith.constant 0 : i32
    %c0_i32_1 = arith.constant 0 : i32
    return %c0_i32, %c0_i32_0 : i32, i32
  }
  func.func @transform_5(%arg0: i32) -> (i32, i32) {
    %c0_i32 = arith.constant 0 : i32
    %c0_i32_0 = arith.constant 0 : i32
    %c0_i32_1 = arith.constant 0 : i32
    return %c0_i32, %c0_i32_0 : i32, i32
  }
  func.func @transform_6(%arg0: i32) -> (i32, i32) {
    %c0_i32 = arith.constant 0 : i32
    %c0_i32_0 = arith.constant 0 : i32
    %c0_i32_1 = arith.constant 0 : i32
    return %c0_i32, %c0_i32_0 : i32, i32
  }
  func.func @transform_7(%arg0: i32) -> (i32, i32) {
    %c0_i32 = arith.constant 0 : i32
    %c0_i32_0 = arith.constant 0 : i32
    %c0_i32_1 = arith.constant 0 : i32
    return %c0_i32, %c0_i32_0 : i32, i32
  }
  func.func @transform_8(%arg0: i32) -> (i32, i32) {
    %c0_i32 = arith.constant 0 : i32
    %c0_i32_0 = arith.constant 0 : i32
    %c0_i32_1 = arith.constant 0 : i32
    return %c0_i32, %c0_i32_0 : i32, i32
  }
  func.func @transform_9(%arg0: i32) -> (i32, i32) {
    %c0_i32 = arith.constant 0 : i32
    %c0_i32_0 = arith.constant 0 : i32
    return %arg0, %c0_i32 : i32, i32
  }
}

</mosaic_0001>

<bundles_post_ra>
// kernel: tpu_custom_call.1
= control target key start
LH: loop header
LB: loop body
LE: loop exit
PB: predicated region body
PF: predicated region fallthrough
CT: control target
= control target key end

     0   :  { %14 = vsyncpa [#allocation3], 0  ;;  %s526_s0 = inlined_call_operand.vmem [shape: f32[8,2], index: 0, kind: input, shape index: {}]   ;;  %s527_s1 = inlined_call_operand.vmem [shape: f32[8,2], index: 1, kind: input, shape index: {}]   ;;  %s528_s2 = inlined_call_operand.vmem [shape: f32[2,32], index: 2, kind: input, shape index: {}]   ;;  %s529_s3 = inlined_call_operand.hbm [shape: f32[2,32], index: 3, kind: input, shape index: {}]   ;;  %s530_s4 = inlined_call_operand.vmem [shape: f32[1,32], index: 4, kind: input, shape index: {}]   ;;  %s531_s5 = inlined_call_operand.vmem [shape: bf16[32,32], index: 5, kind: input, shape index: {}]   ;;  %s532_s6 = inlined_call_operand.vmem [shape: f32[1,32], index: 6, kind: input, shape index: {}]   ;;  %s533_s7 = inlined_call_operand.vmem [shape: bf16[32,128], index: 7, kind: input, shape index: {}]   ;;  %s534_s8 = inlined_call_operand.vmem [shape: f32[1,128], index: 8, kind: input, shape index: {}]   ;;  %s535_s9 = inlined_call_operand.hbm [shape: f32[8,128], index: 9, kind: output, shape index: {}]  }
   0x1   :  { %15 = vsyncpa [#allocation4], 0  ;;  %s414_s30 = smov [#allocation2]   ;;  %s366_s13 = scalar_lea.hbm %s529_s3, 32 }
   0x2   :  { %s28_s10 = sshll.u32 %s414_s30, 4  ;;  %p367_p0 = scmp.ne.s32.totalorder %s529_s3, %s366_s13  ;;  %s29_s10 = int_to_ptr.vmem [resolvable:$true] %s28_s10 }
   0x3   :  { %p370_p1 = scmp.lt.u32.totalorder %s366_s13, %s529_s3 }
   0x5   :  { %p372_p2 = pnand %p370_p1, %p367_p0 }
   0x7   :  { %375 = shalt.err (!%p372_p2)
}
   0x8   :  { %s376_s18 = scalar_lea.vmem %s29_s10, 32  ;;  %p381_p4 = scmp.lt.s32.totalorder %s29_s10, %s29_s10 }
   0x9   :  { %p377_p3 = scmp.ne.s32.totalorder %s29_s10, %s376_s18  ;;  %p382_p5 = scmp.lt.s32.totalorder %s376_s18, %s376_s18 }
   0xb   :  { %p383_p6 = por %p382_p5, %p381_p4 }
   0xd   :  { %p384_p7 = pnand %p383_p6, %p377_p3 }
   0xf   :  { %387 = shalt.err (!%p384_p7)
}
  0x10   :  { %31 = dma.hbm_to_vmem [thread:$0]  %s529_s3, 32, %s29_s10, [#allocation3]  }
  0x11   :  { %410 = dma.done.wait [#allocation3], 32  }
  0x12   :  { %411 = vsyncadd [#allocation3], 4294967264  ;;  %v415_v0 = vmov 0.0   ;;  %vm416_vm0 = vmmov 0   ;;  %v52_v1 = vld [vmem:[#allocation2] sm:$0x3] }
  0x13   :  { %330 = vmatprep.subr.bf16.mxu0 %v415_v0  ;;  %336 = vmatprep.subr.bf16.mxu1 %v415_v0  ;;  %vm58_vm1 = vcmask 1040384   ;;  %v48_v2 = vld [vmem:[%s528_s2] sm:$0x3]  ;;  %v53_v4 = vpack.c.bf16 %v52_v1, %v52_v1  ;;  %vm54_vm2 = vcmask 15360   ;;  %v363_v12 = vld [vmem:[%s531_s5 + $0x8] sm:$0xff]   ;;  %vm181_vm3 = vcmask 261120  }
  0x14   :  { %332 = vmatprep.mubr.msk.bf16.mxu0 %vm416_vm0, %v415_v0  ;;  %338 = vmatprep.mubr.msk.bf16.mxu1 %vm416_vm0, %v415_v0  ;;  %v50_v3 = vld [vmem:[%s527_s1] sm:$0xff]  ;;  %v49_v5 = vpack.c.bf16 %v48_v2, %v48_v2  ;;  %v365_v27 = vld [vmem:[%s533_s7 + $0x8] sm:$0xff]   ;;  %s417_s14 = smov [#allocation5]  }
  0x15   :  { %v46_v6 = vld [vmem:[%s526_s0] sm:$0xff]  ;;  %v60_v7 = vsel %vm58_vm1, %v53_v4, 0  ;;  %v51_v9 = vpack.c.bf16 %v50_v3, %v50_v3  ;;  %s300_s15 = sshll.u32 %s417_s14, 4  ;;  %s301_s15 = int_to_ptr.vmem [resolvable:$true] %s300_s15 }
  0x16   :  { %v106_v8 = vsel %vm58_vm1, %v49_v5, 0  ;;  %v47_v10 = vpack.c.bf16 %v46_v6, %v46_v6  ;;  %331 = vmatpush3.bf16.msra.mxu0 %v60_v7  ;;  %v362_v11 = vld [vmem:[%s531_s5] sm:$0xff]   ;;  %p393_p9 = scmp.lt.s32.totalorder %s301_s15, %s301_s15 }
  0x17   :  { %337 = vmatpush3.bf16.msra.mxu1 %v106_v8  ;;  %342 = vmatprep.subr.bf16.mxu0 %v415_v0  ;;  %v364_v13 = vld [vmem:[%s533_s7] sm:$0xff]  }
  0x18   :  { %350 = vmatprep.subr.bf16.mxu1 %v415_v0  ;;  %v311_v16 = vld [vmem:[%s530_s4] ss:$0 sm:$0xff] }
  0x19   :  { %333 = vmatmul.mubr.msk.bf16.vlgmr.msra.gmra.mrb[0].mxu0 %vm54_vm2, %v51_v9  ;;  %v312_v28 = vld [vmem:[%s532_s6] ss:$0 sm:$0xff]  ;;  %s388_s6 = scalar_lea.vmem %s301_s15, 128 }
  0x1a   :  { %339 = vmatmul.mubr.msk.bf16.vlgmr.msra.gmra.mrb[0].mxu1 %vm54_vm2, %v47_v10  ;;  %346 = vmatprep.mubr.msk.bf16.mxu0 %vm416_vm0, %v415_v0  ;;  %v316_v36 = vld [vmem:[%s534_s8] ss:$0 sm:$0xff]  ;;  %p389_p8 = scmp.ne.s32.totalorder %s301_s15, %s388_s6  ;;  %p394_p10 = scmp.lt.s32.totalorder %s388_s6, %s388_s6 }
  0x1b   :  { %354 = vmatprep.mubr.msk.bf16.mxu1 %vm416_vm0, %v415_v0  ;;  %343 = vmatpush3.bf16.msra.mxu0 %v362_v11 }
  0x1c   :  { %344 = vmatprep.subr.bf16.mxu0 %v415_v0  ;;  %351 = vmatpush3.bf16.msra.mxu1 %v364_v13  ;;  %p395_p11 = por %p394_p10, %p393_p9 }
  0x1d   :  { %352 = vmatprep.subr.bf16.mxu1 %v415_v0 }
  0x1e   :  { %p396_p12 = pnand %p395_p11, %p389_p8 }
  0x1f   :  { %345 = vmatpush3.bf16.msra.mxu0 %v363_v12 }
  0x20   :  { %353 = vmatpush3.bf16.msra.mxu1 %v365_v27 }
  0xec   :  { %v96_v14 = vpop.f32.mrb[0].mxu0 }
  0xed   :  { %v142_v15 = vpop.f32.mrb[0].mxu1  ;;  %v334_v18 = vpop.f32.mrb[1].mxu0 }
  0xee   :  { %v143_v17 = vadd.f32 %v142_v15, %v96_v14  ;;  %v340_v19 = vpop.f32.mrb[1].mxu1  ;;  %v99_v20 = vpop.f32.mrb[2].mxu0 }
  0xef   :  { %v145_v21 = vpop.f32.mrb[2].mxu1  ;;  %v335_v23 = vpop.f32.mrb[3].mxu0 }
  0xf0   :  { %v155_v22 = vadd.f32 %v311_v16, %v143_v17  ;;  %v341_v24 = vpop.f32.mrb[3].mxu1 }
  0xf2   :  { %v156_v25 = vmax.f32 %v155_v22, 0.0 }
  0xf4   :  { %v157_v26 = vpack.c.bf16 %v156_v25, %v156_v25 }
  0xf6   :  { %347 = vmatmul.mubr.msk.bf16.vlgmr.msra.gmra.mrb[4].mxu0 %vm181_vm3, %v157_v26 }
 0x1c9   :  { %v219_v29 = vpop.f32.mrb[4].mxu0 }
 0x1ca   :  { %v220_v30 = vadd.f32 %v312_v28, %v219_v29  ;;  %v348_v31 = vpop.f32.mrb[5].mxu0 }
 0x1cb   :  { %v222_v32 = vpop.f32.mrb[6].mxu0 }
 0x1cc   :  { %v225_v33 = vmax.f32 %v220_v30, 0.0  ;;  %v349_v34 = vpop.f32.mrb[7].mxu0 }
 0x1ce   :  { %v226_v35 = vpack.c.bf16 %v225_v33, %v225_v33 }
 0x1d0   :  { %355 = vmatmul.mubr.msk.bf16.vlgmr.msra.gmra.mrb[4].mxu1 %vm181_vm3, %v226_v35 }
 0x2a3   :  { %v287_v37 = vpop.f32.mrb[4].mxu1 }
 0x2a4   :  { %v288_v38 = vadd.f32 %v316_v36, %v287_v37  ;;  %v356_v39 = vpop.f32.mrb[5].mxu1 }
 0x2a5   :  { %v290_v40 = vpop.f32.mrb[6].mxu1 }
 0x2a6   :  { %293 = vst [vmem:[#allocation5] sm:$0xff] %v288_v38  ;;  %v357_v41 = vpop.f32.mrb[7].mxu1 }
 0x2a7   :  { %399 = shalt.err (!%p396_p12)
}
 0x2a8   :  { %s400_s8 = scalar_lea.hbm %s535_s9, 128 }
 0x2a9   :  { %p401_p13 = scmp.ne.s32.totalorder %s535_s9, %s400_s8  ;;  %p404_p0 = scmp.lt.u32.totalorder %s400_s8, %s535_s9 }
 0x2ab   :  { %p406_p1 = pnand %p404_p0, %p401_p13 }
 0x2ad   :  { %409 = shalt.err (!%p406_p1)
}
 0x2ae   :  { %303 = dma.vmem_to_hbm [thread:$0]  %s301_s15, 128, %s535_s9, [#allocation4]  }
 0x2af   :  { %412 = dma.done.wait [#allocation4], 128  }
 0x2b0   :  { %413 = vsyncadd [#allocation4], 4294967168 }
 0x2b1   :  { %307 = vsyncpa [#allocation3], 1 }
 0x2b2   :  { %308 = vsyncpa [#allocation4], 1 }

</bundles_post_ra>
